<compile_context>
chip_gen: v7x
topology: tpu7x:2x2x1
jax: 0.10.0
libtpu: 0.0.40
codegen_flags: <defaults>
</compile_context>

<pallas_src>
import jax
import jax.numpy as jnp
from jax.experimental import pallas as pl
from jax.experimental.pallas import tpu as pltpu

LANE = 128


# ----------------------------------------------------------------------------
# small helpers
# ----------------------------------------------------------------------------
def _round_up(x, m):
    return ((x + m - 1) // m) * m


def _pad_blocks(a, axis, blk, blk_p, n):
    """Split `axis` into n blocks of size blk and zero-pad each block to blk_p."""
    if blk == blk_p:
        return a
    pieces = jnp.split(a, n, axis=axis)
    widths = [(0, 0)] * a.ndim
    widths[axis] = (0, blk_p - blk)
    return jnp.concatenate([jnp.pad(p, widths) for p in pieces], axis=axis)


def _pick_vocab_tile(vp):
    for tv in (2048, 1024, 512, 256, 128):
        if vp % tv == 0:
            return tv
    return vp


# ----------------------------------------------------------------------------
# Encoder: fused bidirectional GRU.  grid = (direction, time).
# gi = x @ W_ih + b_ih is precomputed outside (one big matmul); only
# gh = h @ W_hh runs inside the serial loop.  Backward direction is handled by
# the index_maps (reads source position Ts-1-t, writes it back un-reversed).
# ----------------------------------------------------------------------------
def enc_bigru_kernel(gi_ref, whh_ref, bhh_ref, lens_ref, out_ref, hfin_ref, h_scr):
    d = pl.program_id(0)
    t = pl.program_id(1)
    T = pl.num_programs(1)

    @pl.when(t == 0)
    def _():
        h_scr[...] = jnp.zeros_like(h_scr)

    # source position of this step: forward -> t, backward -> T-1-t
    s = jnp.where(d == 0, t, T - 1 - t)
    valid = s < lens_ref[...]                       # (B, 1) bool

    h = h_scr[...]                                  # (B, Hp) f32
    Hp = h.shape[1]
    gi = gi_ref[0, 0]                               # (B, 3Hp) f32 (precomputed)
    gh = (jnp.dot(h.astype(jnp.bfloat16), whh_ref[0],
                  preferred_element_type=jnp.float32) + bhh_ref[0])

    r = jax.nn.sigmoid(gi[:, :Hp] + gh[:, :Hp])
    z = jax.nn.sigmoid(gi[:, Hp:2 * Hp] + gh[:, Hp:2 * Hp])
    n = jnp.tanh(gi[:, 2 * Hp:] + r * gh[:, 2 * Hp:])
    h_new = (1.0 - z) * n + z * h

    # packed-sequence semantics: freeze hidden past each length, zero padding.
    h_new = jnp.where(valid, h_new, h)
    h_scr[...] = h_new
    out_ref[0, 0] = jnp.where(valid, h_new, 0.0)

    @pl.when(t == T - 1)
    def _():
        hfin_ref[0] = h_new


def encoder_forward(params, dims, terms, terms_lengths):
    B, Ts = terms.shape
    Hp = dims["Hp"]

    emb = jnp.take(params["enc_emb"], terms, axis=0)          # (B, Ts, E) bf16
    x_tm = jnp.transpose(emb, (1, 0, 2))                      # (Ts, B, E)

    # Hoisted input projection for both directions: one batched MXU matmul.
    gi = (jnp.einsum("sbe,deh->dsbh", x_tm, params["enc_wih"],
                     preferred_element_type=jnp.float32)
          + params["enc_bih"][:, None, None, :])              # (2, Ts, B, 3Hp) f32

    lens = terms_lengths.astype(jnp.int32)[:, None]           # (B, 1)

    src_map = lambda d, t: (d, d * (Ts - 1 - t) + (1 - d) * t, 0, 0)

    out, hfin = pl.pallas_call(
        enc_bigru_kernel,
        out_shape=(jax.ShapeDtypeStruct((2, Ts, B, Hp), jnp.float32),
                   jax.ShapeDtypeStruct((2, B, Hp), jnp.float32)),
        grid_spec=pltpu.PrefetchScalarGridSpec(
            num_scalar_prefetch=0,
            grid=(2, Ts),
            in_specs=[
                pl.BlockSpec((1, 1, B, 3 * Hp), src_map),
                pl.BlockSpec((1, Hp, 3 * Hp), lambda d, t: (d, 0, 0)),
                pl.BlockSpec((1, 1, 3 * Hp), lambda d, t: (d, 0, 0)),
                pl.BlockSpec((B, 1), lambda d, t: (0, 0)),
            ],
            out_specs=(
                pl.BlockSpec((1, 1, B, Hp), src_map),
                pl.BlockSpec((1, B, Hp), lambda d, t: (d, 0, 0)),
            ),
            scratch_shapes=[pltpu.VMEM((B, Hp), jnp.float32)],
        ),
        compiler_params=pltpu.CompilerParams(
            dimension_semantics=("parallel", "arbitrary")),
    )(gi, params["enc_whh"], params["enc_bhh"], lens)

    # (B, Ts, Dp) with layout [fwd Hp | bwd Hp]; padded lanes are exactly zero.
    enc_out = jnp.transpose(jnp.concatenate([out[0], out[1]], axis=-1), (1, 0, 2))
    h0 = jnp.concatenate([hfin[0], hfin[1]], axis=-1)          # (B, Dp)
    return enc_out, h0, lens


# ----------------------------------------------------------------------------
# Decoder kernel 1: serial GRU over target steps, emits all hidden states.
# ----------------------------------------------------------------------------
def dec_gru_kernel(gi_ref, h0_ref, whh_ref, bhh_ref, hs_ref, h_scr):
    t = pl.program_id(0)

    @pl.when(t == 0)
    def _():
        h_scr[...] = h0_ref[...]

    h = h_scr[...]                                  # (B, Dp) f32
    Dp = h.shape[1]
    gi = gi_ref[0]                                  # (B, 3Dp) f32 (precomputed)
    gh = (jnp.dot(h.astype(jnp.bfloat16), whh_ref[...],
                  preferred_element_type=jnp.float32) + bhh_ref[...])

    r = jax.nn.sigmoid(gi[:, :Dp] + gh[:, :Dp])
    z = jax.nn.sigmoid(gi[:, Dp:2 * Dp] + gh[:, Dp:2 * Dp])
    n = jnp.tanh(gi[:, 2 * Dp:] + r * gh[:, 2 * Dp:])
    h_new = (1.0 - z) * n + z * h
    h_scr[...] = h_new
    hs_ref[0] = h_new


# ----------------------------------------------------------------------------
# Decoder kernel 2: length-masked dot-product attention, batched over all
# target steps at once (context never feeds back into the recurrence).
# ----------------------------------------------------------------------------
def attn_kernel(hs_ref, enc_ref, lens_ref, ctx_ref):
    hs = hs_ref[...]                                 # (B, Tt, Dp) bf16
    enc = enc_ref[...]                               # (B, Ts, Dp) bf16
    scores = jnp.einsum("btd,bsd->bts", hs, enc,
                        preferred_element_type=jnp.float32)        # (B, Tt, Ts)
    Ts = enc.shape[1]
    pos = jax.lax.broadcasted_iota(jnp.int32, (1, 1, Ts), 2)
    valid = pos < lens_ref[...][:, None, :]                         # (B, 1, Ts)
    scores = jnp.where(valid, scores, -1e30)
    alpha = jax.nn.softmax(scores, axis=-1)
    ctx_ref[...] = jnp.einsum("bts,bsd->btd", alpha.astype(enc.dtype), enc,
                              preferred_element_type=jnp.float32)


# ----------------------------------------------------------------------------
# Decoder kernel 3: vocabulary projection, one (B*Tt, Dp) x (Dp, tv) matmul
# per vocab tile (lane-dense output, vocab tiled to bound VMEM).
# ----------------------------------------------------------------------------
def vocab_proj_kernel(h_ref, c_ref, woh_ref, woc_ref, bo_ref, out_ref):
    out_ref[...] = (
        jnp.dot(h_ref[...], woh_ref[...], preferred_element_type=jnp.float32)
        + jnp.dot(c_ref[...], woc_ref[...], preferred_element_type=jnp.float32)
        + bo_ref[...])


def decoder_forward(params, dims, encoded_captions, h0, enc_out, lens,
                    encoded_lengths):
    # TODO(synk): pack_padded_sequence over decode lengths has no Pallas
    # equivalent; logits are produced for every target step (callers mask loss).
    del encoded_lengths
    B, Tt = encoded_captions.shape
    Dp, Vp, Vt = dims["Dp"], dims["Vp"], dims["Vt"]

    emb = jnp.take(params["dec_emb"], encoded_captions, axis=0)    # (B, Tt, Ed)
    emb_tm = jnp.transpose(emb, (1, 0, 2))                         # (Tt, B, Ed)

    # Hoisted input projection: one (Tt*B, Ed) x (Ed, 3Dp) matmul.
    gi = (jnp.einsum("tbe,eh->tbh", emb_tm, params["dec_wih"],
                     preferred_element_type=jnp.float32)
          + params["dec_bih"][None, None, :])                      # (Tt, B, 3Dp)

    # ---- serial GRU (only h @ W_hh remains in the loop) ----
    hs_tm = pl.pallas_call(
        dec_gru_kernel,
        out_shape=jax.ShapeDtypeStruct((Tt, B, Dp), jnp.float32),
        grid_spec=pltpu.PrefetchScalarGridSpec(
            num_scalar_prefetch=0,
            grid=(Tt,),
            in_specs=[
                pl.BlockSpec((1, B, 3 * Dp), lambda t: (t, 0, 0)),
                pl.BlockSpec((B, Dp), lambda t: (0, 0)),
                pl.BlockSpec((Dp, 3 * Dp), lambda t: (0, 0)),
                pl.BlockSpec((1, 3 * Dp), lambda t: (0, 0)),
            ],
            out_specs=pl.BlockSpec((1, B, Dp), lambda t: (t, 0, 0)),
            scratch_shapes=[pltpu.VMEM((B, Dp), jnp.float32)],
        ),
        compiler_params=pltpu.CompilerParams(dimension_semantics=("arbitrary",)),
    )(gi, h0, params["dec_whh"], params["dec_bhh"])

    hs = jnp.transpose(hs_tm, (1, 0, 2)).astype(jnp.bfloat16)      # (B, Tt, Dp)
    enc_bf = enc_out.astype(jnp.bfloat16)

    # ---- attention over encoder outputs (all target steps at once) ----
    ctx = pl.pallas_call(
        attn_kernel,
        out_shape=jax.ShapeDtypeStruct((B, Tt, Dp), jnp.float32),
    )(hs, enc_bf, lens)

    # ---- vocab projection, lane-dense and vocab-tiled ----
    N = B * Tt
    h2 = hs.reshape(N, Dp)
    c2 = ctx.reshape(N, Dp).astype(jnp.bfloat16)
    TV = _pick_vocab_tile(Vp)

    logits2 = pl.pallas_call(
        vocab_proj_kernel,
        out_shape=jax.ShapeDtypeStruct((N, Vp), jnp.float32),
        grid_spec=pltpu.PrefetchScalarGridSpec(
            num_scalar_prefetch=0,
            grid=(Vp // TV,),
            in_specs=[
                pl.BlockSpec((N, Dp), lambda v: (0, 0)),
                pl.BlockSpec((N, Dp), lambda v: (0, 0)),
                pl.BlockSpec((Dp, TV), lambda v: (0, v)),
                pl.BlockSpec((Dp, TV), lambda v: (0, v)),
                pl.BlockSpec((1, TV), lambda v: (0, v)),
            ],
            out_specs=pl.BlockSpec((N, TV), lambda v: (0, v)),
        ),
        compiler_params=pltpu.CompilerParams(dimension_semantics=("parallel",)),
    )(h2, c2, params["dec_woh"], params["dec_woc"], params["dec_bo"])

    return logits2.reshape(B, Tt, Vp)[:, :, :Vt]                   # (B, Tt, Vt)


# ----------------------------------------------------------------------------
# LanguageGenerator.forward
# ----------------------------------------------------------------------------
def language_generator_forward(params, dims, terms, terms_lengths,
                               encoded_captions, encoded_lengths):
    enc_out, h0, lens = encoder_forward(params, dims, terms, terms_lengths)
    # torch.cat([hidden[0], hidden[1]], dim=1).unsqueeze(0) -> decoder h0
    return decoder_forward(params, dims, encoded_captions, h0, enc_out, lens,
                           encoded_lengths)


# ----------------------------------------------------------------------------
# Deterministic parameter init (+ lane-padding of weights).
# Padded rows/columns are zero so the padded model is exactly the logical one.
# ----------------------------------------------------------------------------
def build_params(key, V_src, V_tgt, E, H, Ed):
    Hp = _round_up(H, LANE)
    D, Dp = 2 * H, 2 * Hp
    Vp = _round_up(V_tgt, LANE)

    ks = iter(jax.random.split(key, 24))
    scale = 0.1
    nrm = lambda shape: scale * jax.random.normal(next(ks), shape, jnp.float32)

    def gru(in_dim, hid):
        return (nrm((in_dim, 3 * hid)), nrm((hid, 3 * hid)),
                nrm((3 * hid,)), nrm((3 * hid,)))

    wih_f, whh_f, bih_f, bhh_f = gru(E, H)
    wih_b, whh_b, bih_b, bhh_b = gru(E, H)
    wih_d, whh_d, bih_d, bhh_d = gru(Ed, D)
    woh, woc, bo = nrm((D, V_tgt)), nrm((D, V_tgt)), nrm((V_tgt,))
    enc_emb, dec_emb = nrm((V_src, E)), nrm((V_tgt, Ed))

    # encoder: 3 gate blocks of width H -> Hp
    pad_enc_cols = lambda w: _pad_blocks(w, w.ndim - 1, H, Hp, 3)
    pad_enc_rows = lambda w: _pad_blocks(w, 0, H, Hp, 1)
    # decoder: hidden D = [fwd H | bwd H] -> Dp = [fwd Hp | bwd Hp]
    pad_dec_cols = lambda w: _pad_blocks(w, w.ndim - 1, H, Hp, 6)   # 3 gates x 2 halves
    pad_dec_rows = lambda w: _pad_blocks(w, 0, H, Hp, 2)

    bf16 = jnp.bfloat16
    params = dict(
        enc_emb=enc_emb.astype(bf16),
        enc_wih=jnp.stack([pad_enc_cols(wih_f), pad_enc_cols(wih_b)]).astype(bf16),
        enc_bih=jnp.stack([pad_enc_cols(bih_f), pad_enc_cols(bih_b)]),
        enc_whh=jnp.stack([pad_enc_rows(pad_enc_cols(whh_f)),
                           pad_enc_rows(pad_enc_cols(whh_b))]).astype(bf16),
        enc_bhh=jnp.stack([pad_enc_cols(bhh_f), pad_enc_cols(bhh_b)])[:, None, :],
        dec_emb=dec_emb.astype(bf16),
        dec_wih=pad_dec_cols(wih_d).astype(bf16),                  # (Ed, 3Dp)
        dec_bih=pad_dec_cols(bih_d),                               # (3Dp,)
        dec_whh=pad_dec_rows(pad_dec_cols(whh_d)).astype(bf16),    # (Dp, 3Dp)
        dec_bhh=pad_dec_cols(bhh_d)[None, :],                      # (1, 3Dp)
        dec_woh=_pad_blocks(pad_dec_rows(woh), 1, V_tgt, Vp, 1).astype(bf16),
        dec_woc=_pad_blocks(pad_dec_rows(woc), 1, V_tgt, Vp, 1).astype(bf16),
        dec_bo=_pad_blocks(bo, 0, V_tgt, Vp, 1)[None, :],          # (1, Vp)
    )
    dims = dict(H=H, Hp=Hp, D=D, Dp=Dp, Vt=V_tgt, Vp=Vp, E=E, Ed=Ed)
    return params, dims


if __name__ == "__main__":
    B, Ts, Tt = 2, 8, 6
    V_src, V_tgt, E, H, Ed = 32, 40, 16, 16, 16

    key = jax.random.PRNGKey(0)
    kp, k1, k2 = jax.random.split(key, 3)
    params, dims = build_params(kp, V_src, V_tgt, E, H, Ed)

    terms = jax.random.randint(k1, (B, Ts), 1, V_src, dtype=jnp.int32)
    terms_lengths = jnp.array([8, 5], dtype=jnp.int32)
    encoded_captions = jax.random.randint(k2, (B, Tt), 1, V_tgt, dtype=jnp.int32)
    encoded_lengths = jnp.array([6, 4], dtype=jnp.int32)

    logits = language_generator_forward(params, dims, terms, terms_lengths,
                                        encoded_captions, encoded_lengths)
    logits = jax.block_until_ready(logits)

    assert logits.shape == (B, Tt, V_tgt), logits.shape
    assert bool(jnp.all(jnp.isfinite(logits)))
    print("KERNEL_OK")
</pallas_src>

<mosaic_0001>
module attributes {stable_mosaic.version = 11 : i64} {
  func.func @enc_bigru_kernel(%arg0: i32, %arg1: i32, %arg2: memref<1x1x2x384xf32, #tpu.memory_space<vmem>>, %arg3: memref<1x128x384xbf16, #tpu.memory_space<vmem>>, %arg4: memref<1x1x384xf32, #tpu.memory_space<vmem>>, %arg5: memref<2x1xi32, #tpu.memory_space<vmem>>, %arg6: memref<1x1x2x128xf32, #tpu.memory_space<vmem>>, %arg7: memref<1x2x128xf32, #tpu.memory_space<vmem>>, %arg8: memref<2x128xf32, #tpu.memory_space<vmem>>) attributes {dimension_semantics = [#tpu.dimension_semantics<parallel>, #tpu.dimension_semantics<arbitrary>], iteration_bounds = array<i64: 2, 8>, scalar_prefetch = 0 : i64, scratch_operands = 1 : i64, tpu.core_type = #tpu.core_type<tc>, window_params = [{transform_indices = @transform_0, window_bounds = array<i64: 1, 1, 2, 384>}, {transform_indices = @transform_1, window_bounds = array<i64: 1, 128, 384>}, {transform_indices = @transform_2, window_bounds = array<i64: 1, 1, 384>}, {pipeline_mode = #tpu.pipeline_mode<synchronous>, transform_indices = @transform_3, window_bounds = array<i64: 2, 1>}, {transform_indices = @transform_4, window_bounds = array<i64: 1, 1, 2, 128>}, {transform_indices = @transform_5, window_bounds = array<i64: 1, 2, 128>}]} {
    %c0_i32 = arith.constant 0 : i32
    %0 = arith.cmpi eq, %arg1, %c0_i32 : i32
    %1 = arith.extui %0 : i1 to i32
    %c0_i32_0 = arith.constant 0 : i32
    %2 = arith.cmpi ne, %1, %c0_i32_0 : i32
    scf.if %2 {
      %cst_27 = arith.constant 0.000000e+00 : f32
      %60 = vector.broadcast %cst_27 : f32 to vector<2x128xf32>
      %c0_28 = arith.constant 0 : index
      %c0_29 = arith.constant 0 : index
      %61 = vector.load %arg8[%c0_28, %c0_29] : memref<2x128xf32, #tpu.memory_space<vmem>>, vector<2x128xf32>
      tpu.vector_store %arg8[%c0_28, %c0_29], %60 {strides = array<i32>} : memref<2x128xf32, #tpu.memory_space<vmem>>, vector<2x128xf32>,
    } else {
    }
    %c0_i32_1 = arith.constant 0 : i32
    %3 = arith.cmpi eq, %arg0, %c0_i32_1 : i32
    %c7_i32 = arith.constant 7 : i32
    %4 = arith.subi %c7_i32, %arg1 : i32
    %5 = arith.select %3, %arg1, %4 : i32
    %c0 = arith.constant 0 : index
    %c0_2 = arith.constant 0 : index
    %6 = vector.load %arg5[%c0, %c0_2] : memref<2x1xi32, #tpu.memory_space<vmem>>, vector<2x1xi32>
    %7 = vector.broadcast %5 : i32 to vector<2x1xi32>
    %8 = arith.cmpi slt, %7, %6 : vector<2x1xi32>
    %c0_3 = arith.constant 0 : index
    %c0_4 = arith.constant 0 : index
    %9 = vector.load %arg8[%c0_3, %c0_4] : memref<2x128xf32, #tpu.memory_space<vmem>>, vector<2x128xf32>
    %c0_5 = arith.constant 0 : index
    %c0_6 = arith.constant 0 : index
    %c0_7 = arith.constant 0 : index
    %c0_8 = arith.constant 0 : index
    %10 = vector.load %arg2[%c0_5, %c0_6, %c0_7, %c0_8] : memref<1x1x2x384xf32, #tpu.memory_space<vmem>>, vector<1x1x2x384xf32>
    %11 = vector.shape_cast %10 : vector<1x1x2x384xf32> to vector<2x384xf32>
    %12 = arith.truncf %9 : vector<2x128xf32> to vector<2x128xbf16>
    %c0_9 = arith.constant 0 : index
    %c0_10 = arith.constant 0 : index
    %c0_11 = arith.constant 0 : index
    %13 = vector.load %arg3[%c0_9, %c0_10, %c0_11] : memref<1x128x384xbf16, #tpu.memory_space<vmem>>, vector<1x128x384xbf16>
    %14 = vector.shape_cast %13 : vector<1x128x384xbf16> to vector<128x384xbf16>
    %cst = arith.constant dense<0.000000e+00> : vector<2x384xf32>
    %15 = tpu.matmul %12, %14, %cst {dimension_numbers = #tpu.dot_dimension_numbers<[1], [0], [0], [1], [0, 0, 1, 1], [], []>} : vector<2x128xbf16>, vector<128x384xbf16>, vector<2x384xf32> -> vector<2x384xf32>
    %c0_12 = arith.constant 0 : index
    %c0_13 = arith.constant 0 : index
    %c0_14 = arith.constant 0 : index
    %16 = vector.load %arg4[%c0_12, %c0_13, %c0_14] : memref<1x1x384xf32, #tpu.memory_space<vmem>>, vector<1x1x384xf32>
    %17 = vector.shape_cast %16 : vector<1x1x384xf32> to vector<1x384xf32>
    %18 = vector.broadcast %17 : vector<1x384xf32> to vector<2x384xf32>
    %19 = arith.addf %15, %18 : vector<2x384xf32>
    %20 = vector.extract_strided_slice %11 {offsets = [0, 0], sizes = [2, 128], strides = [1, 1]} : vector<2x384xf32> to vector<2x128xf32>
    %21 = vector.extract_strided_slice %19 {offsets = [0, 0], sizes = [2, 128], strides = [1, 1]} : vector<2x384xf32> to vector<2x128xf32>
    %22 = arith.addf %20, %21 : vector<2x128xf32>
    %23 = arith.negf %22 : vector<2x128xf32>
    %24 = math.exp %23 : vector<2x128xf32>
    %cst_15 = arith.constant 1.000000e+00 : f32
    %25 = vector.broadcast %cst_15 : f32 to vector<2x128xf32>
    %26 = arith.addf %25, %24 : vector<2x128xf32>
    %27 = arith.divf %25, %26 : vector<2x128xf32>
    %28 = vector.extract_strided_slice %11 {offsets = [0, 128], sizes = [2, 128], strides = [1, 1]} : vector<2x384xf32> to vector<2x128xf32>
    %29 = vector.extract_strided_slice %19 {offsets = [0, 128], sizes = [2, 128], strides = [1, 1]} : vector<2x384xf32> to vector<2x128xf32>
    %30 = arith.addf %28, %29 : vector<2x128xf32>
    %31 = arith.negf %30 : vector<2x128xf32>
    %32 = math.exp %31 : vector<2x128xf32>
    %cst_16 = arith.constant 1.000000e+00 : f32
    %33 = vector.broadcast %cst_16 : f32 to vector<2x128xf32>
    %34 = arith.addf %33, %32 : vector<2x128xf32>
    %35 = arith.divf %33, %34 : vector<2x128xf32>
    %36 = vector.extract_strided_slice %11 {offsets = [0, 256], sizes = [2, 128], strides = [1, 1]} : vector<2x384xf32> to vector<2x128xf32>
    %37 = vector.extract_strided_slice %19 {offsets = [0, 256], sizes = [2, 128], strides = [1, 1]} : vector<2x384xf32> to vector<2x128xf32>
    %38 = arith.mulf %27, %37 : vector<2x128xf32>
    %39 = arith.addf %36, %38 : vector<2x128xf32>
    %40 = math.tanh %39 : vector<2x128xf32>
    %cst_17 = arith.constant 1.000000e+00 : f32
    %41 = vector.broadcast %cst_17 : f32 to vector<2x128xf32>
    %42 = arith.subf %41, %35 : vector<2x128xf32>
    %43 = arith.mulf %42, %40 : vector<2x128xf32>
    %44 = arith.mulf %35, %9 : vector<2x128xf32>
    %45 = arith.addf %43, %44 : vector<2x128xf32>
    %46 = vector.shape_cast %8 : vector<2x1xi1> to vector<2x1xi1>
    %47 = vector.broadcast %46 : vector<2x1xi1> to vector<2x128xi1>
    %48 = arith.select %47, %45, %9 : vector<2x128xi1>, vector<2x128xf32>
    %c0_18 = arith.constant 0 : index
    %c0_19 = arith.constant 0 : index
    %49 = vector.load %arg8[%c0_18, %c0_19] : memref<2x128xf32, #tpu.memory_space<vmem>>, vector<2x128xf32>
    tpu.vector_store %arg8[%c0_18, %c0_19], %48 {strides = array<i32>} : memref<2x128xf32, #tpu.memory_space<vmem>>, vector<2x128xf32>,
    %cst_20 = arith.constant 0.000000e+00 : f32
    %50 = vector.shape_cast %8 : vector<2x1xi1> to vector<2x1xi1>
    %51 = vector.broadcast %50 : vector<2x1xi1> to vector<2x128xi1>
    %52 = vector.broadcast %cst_20 : f32 to vector<2x128xf32>
    %53 = arith.select %51, %48, %52 : vector<2x128xi1>, vector<2x128xf32>
    %c0_21 = arith.constant 0 : index
    %c0_22 = arith.constant 0 : index
    %c0_23 = arith.constant 0 : index
    %c0_24 = arith.constant 0 : index
    %54 = vector.load %arg6[%c0_21, %c0_22, %c0_23, %c0_24] : memref<1x1x2x128xf32, #tpu.memory_space<vmem>>, vector<1x1x2x128xf32>
    %55 = vector.shape_cast %54 : vector<1x1x2x128xf32> to vector<2x128xf32>
    %56 = vector.shape_cast %53 : vector<2x128xf32> to vector<1x1x2x128xf32>
    tpu.vector_store %arg6[%c0_21, %c0_22, %c0_23, %c0_24], %56 {strides = array<i32>} : memref<1x1x2x128xf32, #tpu.memory_space<vmem>>, vector<1x1x2x128xf32>,
    %c7_i32_25 = arith.constant 7 : i32
    %57 = arith.cmpi eq, %arg1, %c7_i32_25 : i32
    %58 = arith.extui %57 : i1 to i32
    %c0_i32_26 = arith.constant 0 : i32
    %59 = arith.cmpi ne, %58, %c0_i32_26 : i32
    scf.if %59 {
      %c0_27 = arith.constant 0 : index
      %c0_28 = arith.constant 0 : index
      %c0_29 = arith.constant 0 : index
      %60 = vector.load %arg7[%c0_27, %c0_28, %c0_29] : memref<1x2x128xf32, #tpu.memory_space<vmem>>, vector<1x2x128xf32>
      %61 = vector.shape_cast %60 : vector<1x2x128xf32> to vector<2x128xf32>
      %62 = vector.shape_cast %48 : vector<2x128xf32> to vector<1x2x128xf32>
      tpu.vector_store %arg7[%c0_27, %c0_28, %c0_29], %62 {strides = array<i32>} : memref<1x2x128xf32, #tpu.memory_space<vmem>>, vector<1x2x128xf32>,
    } else {
    }
    return
  }
  func.func @transform_0(%arg0: i32, %arg1: i32) -> (i32, i32, i32, i32) {
    %c7_i32 = arith.constant 7 : i32
    %0 = arith.subi %c7_i32, %arg1 : i32
    %1 = arith.muli %arg0, %0 : i32
    %c1_i32 = arith.constant 1 : i32
    %2 = arith.subi %c1_i32, %arg0 : i32
    %3 = arith.muli %2, %arg1 : i32
    %4 = arith.addi %1, %3 : i32
    %c0_i32 = arith.constant 0 : i32
    %c0_i32_0 = arith.constant 0 : i32
    %c0_i32_1 = arith.constant 0 : i32
    return %arg0, %4, %c0_i32, %c0_i32_0 : i32, i32, i32, i32
  }
  func.func @transform_1(%arg0: i32, %arg1: i32) -> (i32, i32, i32) {
    %c0_i32 = arith.constant 0 : i32
    %c0_i32_0 = arith.constant 0 : i32
    %c0_i32_1 = arith.constant 0 : i32
    return %arg0, %c0_i32, %c0_i32_0 : i32, i32, i32
  }
  func.func @transform_2(%arg0: i32, %arg1: i32) -> (i32, i32, i32) {
    %c0_i32 = arith.constant 0 : i32
    %c0_i32_0 = arith.constant 0 : i32
    %c0_i32_1 = arith.constant 0 : i32
    return %arg0, %c0_i32, %c0_i32_0 : i32, i32, i32
  }
  func.func @transform_3(%arg0: i32, %arg1: i32) -> (i32, i32) {
    %c0_i32 = arith.constant 0 : i32
    %c0_i32_0 = arith.constant 0 : i32
    %c0_i32_1 = arith.constant 0 : i32
    return %c0_i32, %c0_i32_0 : i32, i32
  }
  func.func @transform_4(%arg0: i32, %arg1: i32) -> (i32, i32, i32, i32) {
    %c7_i32 = arith.constant 7 : i32
    %0 = arith.subi %c7_i32, %arg1 : i32
    %1 = arith.muli %arg0, %0 : i32
    %c1_i32 = arith.constant 1 : i32
    %2 = arith.subi %c1_i32, %arg0 : i32
    %3 = arith.muli %2, %arg1 : i32
    %4 = arith.addi %1, %3 : i32
    %c0_i32 = arith.constant 0 : i32
    %c0_i32_0 = arith.constant 0 : i32
    %c0_i32_1 = arith.constant 0 : i32
    return %arg0, %4, %c0_i32, %c0_i32_0 : i32, i32, i32, i32
  }
  func.func @transform_5(%arg0: i32, %arg1: i32) -> (i32, i32, i32) {
    %c0_i32 = arith.constant 0 : i32
    %c0_i32_0 = arith.constant 0 : i32
    %c0_i32_1 = arith.constant 0 : i32
    return %arg0, %c0_i32, %c0_i32_0 : i32, i32, i32
  }
}

</mosaic_0001>

<bundles_post_ra>
// kernel: tpu_custom_call.1
= control target key start
LH: loop header
LB: loop body
LE: loop exit
PB: predicated region body
PF: predicated region fallthrough
CT: control target
= control target key end

     0   :  { %s1817_s0 = inlined_call_operand.hbm [shape: f32[2,8,2,384], index: 0, kind: input, shape index: {}]   ;;  %s1818_s1 = inlined_call_operand.hbm [shape: bf16[2,128,384], index: 1, kind: input, shape index: {}]   ;;  %s1819_s2 = inlined_call_operand.vmem [shape: f32[2,1,384], index: 2, kind: input, shape index: {}]   ;;  %s1820_s3 = inlined_call_operand.vmem [shape: s32[2,1], index: 3, kind: input, shape index: {}]   ;;  %s1821_s4 = inlined_call_operand.hbm [shape: f32[2,8,2,128], index: 4, kind: output, shape index: {0}]   ;;  %s1822_s5 = inlined_call_operand.hbm [shape: f32[2,2,128], index: 5, kind: output, shape index: {1}]  }
   0x1   :  { %1836 = sst [smem:[#allocation25_spill]] %s1817_s0 }
   0x2   :  { %1837 = sst [smem:[#allocation26_spill]] %s1818_s1 }
   0x3   :  { %1838 = sst [smem:[#allocation27_spill]] %s1819_s2 }
   0x4   :  { %11 = vsyncpa [#allocation4], 0 }
   0x5   :  { %13 = vsyncpa [#allocation4 + $0x1], 0 }
   0x6   :  { %14 = vsyncpa [#allocation7], 0 }
   0x7   :  { %16 = vsyncpa [#allocation7 + $0x1], 0 }
   0x8   :  { %17 = vsyncpa [#allocation5], 0 }
   0x9   :  { %19 = vsyncpa [#allocation5 + $0x1], 0 }
   0xa   :  { %20 = vsyncpa [#allocation10], 0 }
   0xb   :  { %22 = vsyncpa [#allocation10 + $0x1], 0  ;;  %s1371_s18 = smov 0   ;;  %s1373_s19 = smov 0  }
   0xc   :  { %s1375_s20 = smov 0   ;;  %s1377_s21 = smov 0  }
   0xd   :  { %s1379_s22 = smov 0   ;;  %s1381_s23 = smov 0  }
   0xe   :  { %s1383_s24 = smov 0   ;;  %s1385_s25 = smov 0  }
   0xf   :  { %s1387_s26 = smov 0   ;;  %s1389_s27 = smov 0  }
  0x10   :  { %s1391_s28 = smov 0  }
  0x11 LB: > { %1839 = sst [smem:[#allocation15_spill]] %s1289_s18  ;;  %s1823_s29 = sadd.s32 4294967295, %s1329_s28   ;;  %s1329_s28 = sphi %s1391_s28, %s28_s28   ;;  %s1325_s27 = sphi %s1389_s27, %s1889_s27   ;;  %s1321_s26 = sphi %s1387_s26, %s1881_s26   ;;  %s1317_s25 = sphi %s1385_s25, %s1888_s25   ;;  %s1313_s24 = sphi %s1383_s24, %s1880_s24   ;;  %s1309_s23 = sphi %s1381_s23, %s1879_s23   ;;  %s1305_s22 = sphi %s1379_s22, %s1887_s22   ;;  %s1301_s21 = sphi %s1377_s21, %s1886_s21   ;;  %s1297_s20 = sphi %s1375_s20, %s1885_s20   ;;  %s1293_s19 = sphi %s1373_s19, %s1884_s19   ;;  %s1289_s18 = sphi %s1371_s18, %s1883_s18  }
  0x12   : > { %1840 = sst [smem:[#allocation16_spill]] %s1301_s21  ;;  %s37_s6 = sadd.s32 1, %s1321_s26 }
  0x13   : > { %1841 = sst [smem:[#allocation17_spill]] %s1309_s23  ;;  %s40_s7 = sadd.s32 1, %s1325_s27 }
  0x14   : > { %1842 = sst [smem:[#allocation18_spill]] %s1321_s26  ;;  %p38_p0 = scmp.ge.s32.totalorder %s37_s6, 8 }
  0x15   : > { %s44_s8 = ssub.s32 7, %s1321_s26  ;;  %s46_s10 = ssub.s32 1, %s1325_s27 }
  0x16   : > { %s45_s9 = smul.u32 %s1325_s27, %s44_s8  ;;  %s1891_s6 = smov (%p38_p0, %s37_s6), 0 }
  0x17   : > { %1843 = sst [smem:[#allocation19_spill]] %s1891_s6  ;;  %s1893_s7 = smov (!%p38_p0, %s40_s7), %s1325_s27 }
  0x18   : > { %s47_s11 = smul.u32 %s1321_s26, %s46_s10  ;;  %s49_s12 = ssub.s32 7, %s1891_s6 }
  0x19   : > { %p42_p1 = scmp.ge.s32.totalorder %s1893_s7, 2  ;;  %s59_s13 = sadd.s32 1, %s1309_s23 }
  0x1a   : > { %s1439_s14 = sadd.s32 %s47_s11, %s45_s9  ;;  %p66_p2 = scmp.ne.s32.totalorder %s1309_s23, %s1305_s22 }
  0x1b   : > { %s1895_s7 = smov (%p42_p1, %s1893_s7), 0  ;;  %p67_p3 = scmp.eq.s32.totalorder %s1329_s28, 0 }
  0x1c   : > { %1844 = sst [smem:[#allocation20_spill]] %s1895_s7  ;;  %p72_p4 = scmp.ne.s32.totalorder %s1305_s22, %s1301_s21 }
  0x1d   : > { %s50_s15 = smul.u32 %s49_s12, %s1895_s7  ;;  %s51_s16 = ssub.s32 1, %s1895_s7 }
  0x1e   : > { %s52_s17 = smul.u32 %s51_s16, %s1891_s6  ;;  %s54_s8 = ssub.s32 %s1325_s27, %s1895_s7 }
  0x1f   : > { %p1458_p5 = por %p67_p3, %p66_p2  ;;  %p1464_p6 = scmp.eq.s32.totalorder %s1823_s29, 0 }
  0x20   : > { %s53_s11 = sadd.s32 %s52_s17, %s50_s15  ;;  %p83_p7 = scmp.eq.s32.totalorder %s54_s8, 0 }
  0x21   : > { %s55_s12 = ssub.s32 %s1439_s14, %s53_s11  ;;  %p1474_p8 = por %p1464_p6, %p72_p4 }
  0x22   : > { %s56_s30 = sor.u32 %s55_s12, %s54_s8  ;;  %s85_s29 = sadd.s32 1, %s1297_s20 }
  0x23   : > { %s1847_s16 = scalar_select %p1474_p8, 1, 0 }
  0x24   : > { %p57_p9 = scmp.eq.s32.totalorder %s56_s30, 0  ;;  %p92_p10 = scmp.ne.s32.totalorder %s1297_s20, %s1293_s19 }
  0x25   : > { %s1482_s7 = scalar_select %p83_p7, %s1297_s20, %s85_s29  }
  0x26   : > { %s1485_s15 = scalar_select %p57_p9, %s1309_s23, %s59_s13  }
  0x27   : > { %1848 = sst [smem:[#allocation21_spill]] %s1482_s7  ;;  %p1489_p11 = por %p92_p10, %p67_p3 }
  0x28   : > { %1849 = sst [smem:[#allocation22_spill]] %s1485_s15  ;;  %p98_p12 = scmp.ne.s32.totalorder %s1293_s19, %s1289_s18 }
  0x29   : > { %s1851_s11 = sadd.s32 4294967295, %s1329_s28   ;;  %s1852_s8 = sadd.s32 4294967294, %s1329_s28  }
  0x2a   : > { %p181_p13 = scmp.eq.s32.totalorder %s1851_s11, 15  ;;  %p187_p0 = scmp.eq.s32.totalorder %s1852_s8, 15 }
  0x2b   : > { %p1501_p1 = por %p98_p12, %p1464_p6  ;;  %s236_s11 = sand.u32 1, %s1309_s23  }
  0x2c   : > { %p1508_p7 = por %p181_p13, %p66_p2  ;;  %p1515_p3 = por %p187_p0, %p72_p4 }
  0x2d   : > { %s1853_s30 = scalar_select %p1501_p1, 1, 0 }
  0x2e   : > { %s1854_s29 = scalar_select %p1508_p7, 1, 0 }
  0x2f   : > { %s1855_s13 = scalar_select %p1515_p3, 1, 0 }
  0x30   : > { %p1519_p9 = por %p181_p13, %p92_p10  ;;  %p1523_p6 = por %p187_p0, %p98_p12 }
  0x31   : > { %1856 = sst [smem:[#allocation23_spill]] %s1855_s13  ;;  %p972_p1 = scmp.lt.s32.totalorder %s1329_s28, 16 }
  0x32   : > { %s1857_s12 = scalar_select %p1519_p9, 1, 0 }
  0x33   : > { %s1858_s10 = scalar_select %p1523_p6, 1, 0 }
  0x34   : > { %s942_s8 = smul.u32 6, %s236_s11  ;;  %p1532_p2 = pnand %p972_p1, %p1458_p5 }
  0x35   : > { %1859 = sst [smem:[#allocation24_spill]] %s1858_s10  ;;  %s943_s6 = smul.u32 3, %s1439_s14 }
  0x36   : > { %s944_s15 = smul.u32 24, %s1325_s27  ;;  %s240_s7 = scalar_lea.vmem [#allocation3], %s942_s8 }
  0x37   : > { %s255_s18 = sshll.u32 %s240_s7, 4  ;;  %p1541_p4 = pnand %p972_p1, %p1489_p11  ;;  %s1537_s18 = int_to_ptr.vmem [resolvable:$true] %s255_s18 }
  0x38   : > { %s251_s13 = sadd.s32 %s944_s15, %s943_s6  ;;  %s1862_s0 = sld [smem:[#allocation25_spill]] }
  0x39   : > { %s873_s21 = sshll.u32 %s251_s13, 5  ;;  %s237_s7 = scalar_lea.sflag [#allocation4], %s236_s11 }
  0x3a   : > { %p1113_p12 = pneg %p1532_p2 }
  0x3e   : > { %s1548_s23 = scalar_lea.hbm %s1862_s0, %s873_s21  ;;  %s1116_s13 = scalar_lea.hbm %s1862_s0, 1536 }
  0x3f   : > { %s1111_s6 = scalar_lea.hbm %s1548_s23, 96  ;;  %p1117_p0 = scmp.lt.u32.totalorder %s1548_s23, %s1862_s0 }
  0x40   : > { %p1112_p10 = scmp.ne.s32.totalorder %s1548_s23, %s1111_s6  ;;  %p1118_p1 = scmp.lt.u32.totalorder %s1116_s13, %s1111_s6 }
  0x41   : > { %p1120_p5 = scmp.lt.u32.totalorder %s1111_s6, %s1548_s23 }
  0x42   : > { %p1114_p11 = pnand %p1113_p12, %p1112_p10  ;;  %p1119_p6 = por %p1118_p1, %p1117_p0 }
  0x44   : > { %p1115_p13 = pneg %p1114_p11  ;;  %p1121_p3 = por %p1120_p5, %p1119_p6 }
  0x46   : > { %p1122_p9 = pnand %p1121_p3, %p1115_p13 }
  0x48   : > { %1125 = shalt.err (!%p1122_p9)
}
  0x49   : > { %s1126_s11 = scalar_lea.vmem %s1537_s18, 96  ;;  %s1331_s14 = smov [#allocation3]  }
  0x4a   : > { %p1127_p10 = scmp.ne.s32.totalorder %s1537_s18, %s1126_s11  ;;  %s1131_s9 = sshll.u32 %s1331_s14, 4  ;;  %s1132_s9 = int_to_ptr.vmem [resolvable:$false] %s1131_s9 }
  0x4b   : > { %s1133_s15 = scalar_lea.vmem %s1132_s9, 192  ;;  %p1134_p8 = scmp.lt.s32.totalorder %s1537_s18, %s1132_s9 }
  0x4c   : > { %p1129_p11 = pnand %p1127_p10, %p1113_p12  ;;  %p1135_p0 = scmp.lt.s32.totalorder %s1133_s15, %s1126_s11 }
  0x4e   : > { %p1130_p7 = pneg %p1129_p11  ;;  %p1136_p1 = por %p1135_p0, %p1134_p8 }
  0x50   : > { %p1137_p6 = pnand %p1136_p1, %p1130_p7 }
  0x52   : > { %1140 = shalt.err (!%p1137_p6)
}
  0x53   : > { %961 = dma.hbm_to_vmem [thread:$0]  (!%p1532_p2), %s1548_s23, 96, %s1537_s18, %s237_s7  }
  0x54   : > { %p288_p3 = scmp.lt.s32.totalorder %s1329_s28, 17  ;;  %s262_s6 = sand.u32 1, %s1297_s20  }
  0x55   : > { %s946_s17 = smul.u32 3072, %s1325_s27  ;;  %p1863_p9 = scmp.ge.s32.totalorder %s1329_s28, 1 }
  0x56   : > { %s945_s21 = smul.u32 192, %s262_s6  ;;  %s1865_s1 = sld [smem:[#allocation26_spill]] }
  0x57   : > { %p1581_p5 = pnand %p1863_p9, %p288_p3  ;;  %s1592_s23 = scalar_lea.sflag [#allocation7], %s262_s6 }
  0x58   : > { %s266_s14 = scalar_lea.vmem [#allocation6], %s945_s21  ;;  %p1143_p7 = pneg %p1541_p4 }
  0x59   : > { %s273_s18 = sshll.u32 %s266_s14, 4  ;;  %s1590_s18 = int_to_ptr.vmem [resolvable:$true] %s273_s18 }
  0x5c   : > { %s1588_s11 = scalar_lea.hbm %s1865_s1, %s946_s17  ;;  %s1146_s17 = scalar_lea.hbm %s1865_s1, 6144 }
  0x5d   : > { %s1141_s7 = scalar_lea.hbm %s1588_s11, 3072  ;;  %p1147_p13 = scmp.lt.u32.totalorder %s1588_s11, %s1865_s1 }
  0x5e   : > { %p1142_p8 = scmp.ne.s32.totalorder %s1588_s11, %s1141_s7  ;;  %p1148_p10 = scmp.lt.u32.totalorder %s1146_s17, %s1141_s7 }
  0x5f   : > { %p1150_p0 = scmp.lt.u32.totalorder %s1141_s7, %s1588_s11 }
  0x60   : > { %p1144_p2 = pnand %p1143_p7, %p1142_p8  ;;  %p1149_p11 = por %p1148_p10, %p1147_p13 }
  0x62   : > { %p1145_p12 = pneg %p1144_p2  ;;  %p1151_p1 = por %p1150_p0, %p1149_p11 }
  0x64   : > { %p1152_p6 = pnand %p1151_p1, %p1145_p12 }
  0x66   : > { %1155 = shalt.err (!%p1152_p6)
}
  0x67   : > { %s1156_s6 = scalar_lea.vmem %s1590_s18, 3072  ;;  %s1332_s21 = smov [#allocation6]  }
  0x68   : > { %p1157_p3 = scmp.ne.s32.totalorder %s1590_s18, %s1156_s6  ;;  %s1161_s14 = sshll.u32 %s1332_s21, 4  ;;  %s1162_s14 = int_to_ptr.vmem [resolvable:$false] %s1161_s14 }
  0x69   : > { %s1163_s9 = scalar_lea.vmem %s1162_s14, 6144  ;;  %p1164_p2 = scmp.lt.s32.totalorder %s1590_s18, %s1162_s14 }
  0x6a   : > { %p1159_p9 = pnand %p1157_p3, %p1143_p7  ;;  %p1165_p13 = scmp.lt.s32.totalorder %s1163_s9, %s1156_s6 }
  0x6c   : > { %p1160_p8 = pneg %p1159_p9  ;;  %p1166_p10 = por %p1165_p13, %p1164_p2 }
  0x6e   : > { %p1167_p11 = pnand %p1166_p10, %p1160_p8 }
  0x70   : > { %1170 = shalt.err (!%p1167_p11)
}
  0x71   : > { %s1333_s7 = smov 192   ;;  %s1334_s15 = smov 12  }
  0x72   : > { %964 = dma.hbm_to_vmem [thread:$0]  (!%p1541_p4), %s1588_s11, 3072, %s1590_s18, %s1592_s23, %s1333_s7, %s1333_s7, %s1334_s15  }
  0x73   : > { %292 = sbr.rel (%p1581_p5) target bundleno = 493 (0x1ed), region = 36  ;;  %s1623_s17 = sand.u32 (!%p1581_p5), 1, %s1305_s22  }
  0x74   : > { %s947_s8 = smul.u32 (!%p1581_p5), 6, %s1623_s17  ;;  %s295_s26 = scalar_lea.sflag (!%p1581_p5), [#allocation4], %s1623_s17 }
  0x75   : > { %p1866_p7 = scmp.ne.s32.totalorder (!%p1581_p5), %s1847_s16, 0 }
  0x76   : > { %s1627_s6 = scalar_lea.vmem (!%p1581_p5), [#allocation3], %s947_s8 }
  0x7a   : > { %1272 = dma.done.wait (%p1866_p7), %s295_s26, 96  }
  0x7b   : > { %1274 = vsyncadd (%p1866_p7), %s295_s26, 4294967200  ;;  %s1634_s10 = sand.u32 1, %s1293_s19   ;;  %p1867_p4 = scmp.ne.s32.totalorder %s1853_s30, 0 }
  0x7c   : > { %s948_s13 = smul.u32 192, %s1634_s10  ;;  %s304_s11 = scalar_lea.sflag [#allocation7], %s1634_s10 }
  0x7e   : > { %s1638_s18 = scalar_lea.vmem [#allocation6], %s948_s13 }
  0x7f   : > { %1276 = dma.done.wait (%p1867_p4), %s304_s11, 3072  }
  0x80   : > { %1278 = vsyncadd (%p1867_p4), %s304_s11, 4294964224  ;;  %s876_s16 = sshll.u32 %s1623_s17, 1  ;;  %s877_s23 = sshll.u32 %s1634_s10, 1 }
  0x81   : > { %p353_p5 = scmp.lt.s32.totalorder %s1317_s25, 1  ;;  %s1868_s2 = sld [smem:[#allocation27_spill]] }
  0x82   : > { %s1653_s8 = scalar_lea.vmem [#allocation8], %s876_s16  ;;  %s1655_s26 = scalar_lea.vmem [#allocation9], %s877_s23 }
  0x83   : > { %s354_s21 = scalar_select %p353_p5, %s1317_s25, 1 }
  0x84   : > { %p878_p12 = scmp.ne.s32.totalorder %s1313_s24, 0 }
  0x85   : > { %s949_s14 = smul.u32 3, %s354_s21  ;;  %v1335_v0 = vmov (!%p878_p12), 0.0  }
  0x86   : > { %366 = sbr.rel (%p878_p12) target bundleno = 141 (0x8d), region = 48  ;;  %367 = vst [vmem:[#allocation2] sm:$0x3] (!%p878_p12), %v1335_v0 }
  0x87   : > { %s1651_s15 = scalar_lea.vmem %s1868_s2, %s949_s14 }
  0x8d PF: > { %v1069_v1 = vld [vmem:[%s1638_s18 + $0x4] ss:$12 sps:$4 sm:$0xff]   ;;  %v1071_v2 = vld [vmem:[%s1638_s18] ss:$12 sps:$4 sm:$0xff]   ;;  %v1336_v3 = vmov 0.0   ;;  %v1337_v4 = vmov 0   ;;  %v411_v32 = vlaneseq }
  0x8e   : > { %922 = vmatprep.subr.bf16.mxu1 %v1336_v3  ;;  %586 = vmatprep.mubr.bf16.mxu0 %v1337_v4  ;;  %v1072_v5 = vld [vmem:[%s1638_s18 + $0x1c] ss:$12 sps:$4 sm:$0xff]   ;;  %vm1338_vm0 = vmmov 0   ;;  %v1074_v6 = vld [vmem:[%s1638_s18 + $0x18] ss:$12 sps:$4 sm:$0xff]   ;;  %p368_p0 = scmp.eq.s32.totalorder %s1317_s25, 0 }
  0x8f   : > { %554 = vmatprep.subr.bf16.mxu0 %v1069_v1  ;;  %938 = vmatprep.mubr.msk.bf16.mxu1 %vm1338_vm0, %v1336_v3  ;;  %v1075_v7 = vld [vmem:[%s1638_s18 + $0x34] ss:$12 sps:$4 sm:$0xff]   ;;  %v1077_v8 = vld [vmem:[%s1638_s18 + $0x30] ss:$12 sps:$4 sm:$0xff]   ;;  %v1078_v9 = vld [vmem:[%s1638_s18 + $0x4c] ss:$12 sps:$4 sm:$0xff]  }
  0x90   : > { %555 = vmatpush1.bf16.msra.mxu0 %v1071_v2  ;;  %1068 = vset.pattern.permute.xlu0 %v1337_v4  ;;  %v1090_v10 = vld [vmem:[%s1638_s18 + $0x8] ss:$12 sps:$4 sm:$0xff]   ;;  %s369_s30 = ssub.s32 7, %s1313_s24  ;;  %v1081_v12 = vld [vmem:[%s1638_s18 + $0x64] ss:$12 sps:$4 sm:$0xff]   ;;  %v412_v33 = vshrl.u32 %v411_v32, 7 }
  0x91   : > { %556 = vmatprep.subr.bf16.mxu0 %v1072_v5  ;;  %v1080_v11 = vld [vmem:[%s1638_s18 + $0x48] ss:$12 sps:$4 sm:$0xff]   ;;  %923 = vmatpush3.bf16.msra.mxu1 %v1090_v10  ;;  %v1094_v13 = vld [vmem:[%s1638_s18 + $0x20] ss:$12 sps:$4 sm:$0xff]   ;;  %s370_s13 = scalar_select %p368_p0, %s1313_s24, %s369_s30  ;;  %v1095_v16 = vld [vmem:[%s1638_s18 + $0x38] ss:$12 sps:$4 sm:$0xff]  }
  0x92   : > { %924 = vmatprep.subr.bf16.mxu1 %v1336_v3  ;;  %v1083_v14 = vld [vmem:[%s1638_s18 + $0x60] ss:$12 sps:$4 sm:$0xff]   ;;  %v1084_v15 = vld [vmem:[%s1638_s18 + $0x7c] ss:$12 sps:$4 sm:$0xff]   ;;  %v1086_v18 = vld [vmem:[%s1638_s18 + $0x78] ss:$12 sps:$4 sm:$0xff]  }
  0x93   : > { %v372_v17 = vstv %s370_s13  ;;  %v371_v19 = vld [vmem:[%s1820_s3] sm:$0x3]  ;;  %v1087_v20 = vld [vmem:[%s1638_s18 + $0x94] ss:$12 sps:$4 sm:$0xff]   ;;  %v1091_v24 = vld [vmem:[%s1638_s18 + $0xac] ss:$12 sps:$4 sm:$0xff]  }
  0x94   : > { %557 = vmatpush1.bf16.msra.mxu0 %v1074_v6  ;;  %v1096_v21 = vld [vmem:[%s1638_s18 + $0x50] ss:$12 sps:$4 sm:$0xff]   ;;  %vm373_vm1 = vcmp.lt.s32.totalorder %v372_v17, %v371_v19  ;;  %v1097_v25 = vld [vmem:[%s1638_s18 + $0x68] ss:$12 sps:$4 sm:$0xff]   ;;  %v1098_v28 = vld [vmem:[%s1638_s18 + $0x80] ss:$12 sps:$4 sm:$0xff]  }
  0x95   : > { %558 = vmatprep.subr.bf16.mxu0 %v1075_v7  ;;  %925 = vmatpush3.bf16.msra.mxu1 %v1094_v13  ;;  %v661_v22 = vsel %vm373_vm1, 1, %v1337_v4  ;;  %v1089_v23 = vld [vmem:[%s1638_s18 + $0x90] ss:$12 sps:$4 sm:$0xff]   ;;  %v1093_v26 = vld [vmem:[%s1638_s18 + $0xa8] ss:$12 sps:$4 sm:$0xff]   ;;  %v413_v34 = vsub.s32 0, %v412_v33 }
  0x96   : > { %926 = vmatprep.subr.bf16.mxu1 %v1336_v3  ;;  %663 = vperm.xlu0 %1068, %v661_v22   ;;  %v1693_v27 = vld [vmem:[#allocation2] sm:$0x3]  ;;  %v1099_v30 = vld [vmem:[%s1638_s18 + $0x98] ss:$12 sps:$4 sm:$0xff]   ;;  %v417_v36 = vsub.s32 1, %v412_v33  ;;  %v421_v57 = vsub.s32 2, %v412_v33 }
  0x97   : > { %v376_v29 = vpack.c.bf16 %v1693_v27, %v1693_v27  ;;  %v1100_v31 = vld [vmem:[%s1638_s18 + $0xb0] ss:$12 sps:$4 sm:$0xff]   ;;  %p905_p1 = scmp.ne.s32.totalorder %s1313_s24, 7 }
  0x98   : > { %559 = vmatpush1.bf16.msra.mxu0 %v1077_v8  ;;  %v409_v35 = vld [vmem:[%s1651_s15] sm:$0x7] }
  0x99   : > { %560 = vmatprep.subr.bf16.mxu0 %v1078_v9  ;;  %927 = vmatpush3.bf16.msra.mxu1 %v1095_v16  ;;  %v414_v37 = vrot.slane %v409_v35, %v413_v34  ;;  %v418_v38 = vrot.slane %v409_v35, %v417_v36  ;;  %v375_v39 = vld [vmem:[%s1627_s6] sm:$0x3f]  ;;  %v422_v58 = vrot.slane %v409_v35, %v421_v57 }
  0x9a   : > { %928 = vmatprep.subr.bf16.mxu1 %v1336_v3  ;;  %v643_v44 = vrot.slane %v375_v39, 2  ;;  %v653_v62 = vrot.slane %v375_v39, 4 }
  0x9c   : > { %561 = vmatpush1.bf16.msra.mxu0 %v1080_v11 }
  0x9d   : > { %562 = vmatprep.subr.bf16.mxu0 %v1081_v12  ;;  %929 = vmatpush3.bf16.msra.mxu1 %v1096_v21 }
  0x9e   : > { %930 = vmatprep.subr.bf16.mxu1 %v1336_v3 }
  0xa0   : > { %563 = vmatpush1.bf16.msra.mxu0 %v1083_v14 }
  0xa1   : > { %564 = vmatprep.subr.bf16.mxu0 %v1084_v15  ;;  %931 = vmatpush3.bf16.msra.mxu1 %v1097_v25 }
  0xa2   : > { %932 = vmatprep.subr.bf16.mxu1 %v1336_v3 }
  0xa4   : > { %565 = vmatpush1.bf16.msra.mxu0 %v1086_v18 }
  0xa5   : > { %566 = vmatprep.subr.bf16.mxu0 %v1087_v20  ;;  %933 = vmatpush3.bf16.msra.mxu1 %v1098_v28 }
  0xa6   : > { %934 = vmatprep.subr.bf16.mxu1 %v1336_v3 }
  0xa8   : > { %567 = vmatpush1.bf16.msra.mxu0 %v1089_v23 }
  0xa9   : > { %568 = vmatprep.subr.bf16.mxu0 %v1091_v24  ;;  %935 = vmatpush3.bf16.msra.mxu1 %v1099_v30 }
  0xaa   : > { %936 = vmatprep.subr.bf16.mxu1 %v1336_v3 }
  0xac   : > { %569 = vmatpush1.bf16.msra.mxu0 %v1093_v26 }
  0xad   : > { %937 = vmatpush3.bf16.msra.mxu1 %v1100_v31 }
  0xaf   : > { %587 = vmatmul.mubr.bf16.vlgmr.msra.gmra.mrb[0].mxu0 %v376_v29 }
  0xb0   : > { %939 = vmatmul.mubr.bf16.vlgmr.msra.gmra.mrb[0].mxu1 %v376_v29 }
 0x115   : > { %v664_v4 = vpop.permute.xlu0 %663 }
 0x116   : > { %vm665_vm2 = vcmp.eq.s32.totalorder %v664_v4, 1 }
 0x182   : > { %v588_v40 = vpop.f32.mrb[0].mxu0 }
 0x183   : > { %v589_v41 = vadd.f32 %v588_v40, %v414_v37  ;;  %v590_v42 = vpop.f32.mrb[1].mxu0  ;;  %v629_v50 = vpop.f32.mrb[0].mxu1 }
 0x184   : > { %v591_v43 = vadd.f32 %v590_v42, %v418_v38  ;;  %v592_v45 = vpop.f32.mrb[2].mxu0  ;;  %v940_v52 = vpop.f32.mrb[1].mxu1  ;;  %v630_v61 = vadd.f32 %v629_v50, %v422_v58 }
 0x185   : > { %v635_v46 = vadd.f32 %v589_v41, %v375_v39  ;;  %v593_v47 = vpop.f32.mrb[3].mxu0  ;;  %v632_v53 = vpop.f32.mrb[2].mxu1 }
 0x186   : > { %v645_v49 = vadd.f32 %v643_v44, %v591_v43  ;;  %v941_v54 = vpop.f32.mrb[3].mxu1 }
 0x187   : > { %v903_v48 = vmul.f32 -1.442695, %v635_v46 }
 0x188   : > { %v904_v51 = vmul.f32 -1.442695, %v645_v49 }
 0x189   : > { %1101 = vpow2.f32 %v903_v48 }
 0x18a   : > { %1103 = vpow2.f32 %v904_v51 }
 0x193   : > { %v1102_v55 = vpop.eup %1101 }
 0x194   : > { %v639_v56 = vadd.f32 1.0, %v1102_v55  ;;  %v1104_v59 = vpop.eup %1103 }
 0x195   : > { %v649_v60 = vadd.f32 1.0, %v1104_v59 }
 0x196   : > { %1105 = vrcp.f32 %v639_v56 }
 0x197   : > { %1107 = vrcp.f32 %v649_v60 }
 0x1a0   : > { %v1106_v63 = vpop.eup %1105 }
 0x1a1   : > { %v652_v0 = vmul.f32 %v1106_v63, %v630_v61  ;;  %v1108_v2 = vpop.eup %1107 }
 0x1a2   : > { %v657_v3 = vsub.f32 1.0, %v1108_v2  ;;  %v659_v7 = vmul.f32 %v1108_v2, %v1693_v27 }
 0x1a3   : > { %v655_v1 = vadd.f32 %v653_v62, %v652_v0 }
 0x1a5   : > { %1109 = vtanh.f32 %v655_v1 }
 0x1af   : > { %v1110_v5 = vpop.eup %1109  ;;  %673 = sbr.rel (%p905_p1) target bundleno = 439 (0x1b7), region = 52 }
 0x1b0   : > { %v658_v6 = vmul.f32 %v1110_v5, %v657_v3 }
 0x1b2   : > { %v660_v8 = vadd.f32 %v659_v7, %v658_v6 }
 0x1b4   : > { %v666_v9 = vsel %vm665_vm2, %v660_v8, %v1693_v27  ;;  %v668_v10 = vsel %vm665_vm2, %v660_v8, 0.0 }
 0x1b5   : > { %667 = vst [vmem:[#allocation2] sm:$0x3] %v666_v9  ;;  %669 = vst [vmem:[%s1653_s8] sm:$0x3] %v668_v10 }
 0x1b6   : > { %674 = vst [vmem:[%s1655_s26] sm:$0x3] %v666_v9 }
 0x1b7 PF: > { %s689_s6 = smul.u32 %s1317_s25, %s369_s30  ;;  %s690_s18 = ssub.s32 1, %s1317_s25 }
 0x1b8   : > { %s908_s23 = sshll.u32 %s1317_s25, 3  ;;  %s691_s21 = smul.u32 %s1313_s24, %s690_s18 }
 0x1b9   : > { %s701_s14 = sshll.u32 %s1653_s8, 4  ;;  %s910_s7 = sshll.u32 %s1317_s25, 5  ;;  %s1717_s14 = int_to_ptr.vmem [resolvable:$true] %s701_s14 }
 0x1ba   : > { %s692_s9 = sadd.s32 %s691_s21, %s689_s6  ;;  %s1723_s16 = scalar_lea.hbm %s1822_s5, %s910_s7 }
 0x1bb   : > { %s697_s15 = sadd.s32 %s908_s23, %s692_s9  ;;  %s714_s30 = sshll.u32 %s1655_s26, 4  ;;  %s1731_s30 = int_to_ptr.vmem [resolvable:$true] %s714_s30 }
 0x1bc   : > { %s909_s0 = sshll.u32 %s697_s15, 5  ;;  %s676_s8 = scalar_lea.sflag [#allocation5], %s1623_s17 }
 0x1bd   : > { %s1729_s24 = scalar_lea.hbm %s1821_s4, %s909_s0  ;;  %s1171_s18 = scalar_lea.vmem %s1717_s14, 32 }
 0x1be   : > { %p1172_p6 = scmp.ne.s32.totalorder %s1717_s14, %s1171_s18  ;;  %p1869_p3 = scmp.ne.s32.totalorder %s1854_s29, 0 }
 0x1bf   : > { %s1339_s25 = smov [#allocation8]  }
 0x1c0   : > { %p1173_p9 = pnand %p1172_p6, %p1869_p3  ;;  %s1175_s6 = sshll.u32 %s1339_s25, 4  ;;  %s1176_s6 = int_to_ptr.vmem [resolvable:$false] %s1175_s6 }
 0x1c1   : > { %s1177_s23 = scalar_lea.vmem %s1176_s6, 64  ;;  %p1178_p2 = scmp.lt.s32.totalorder %s1717_s14, %s1176_s6 }
 0x1c2   : > { %p1174_p8 = pneg %p1173_p9  ;;  %p1179_p13 = scmp.lt.s32.totalorder %s1177_s23, %s1171_s18 }
 0x1c4   : > { %p1180_p10 = por %p1179_p13, %p1178_p2 }
 0x1c6   : > { %p1181_p11 = pnand %p1180_p10, %p1174_p8 }
 0x1c8   : > { %1184 = shalt.err (!%p1181_p11)
}
 0x1c9   : > { %s1185_s0 = scalar_lea.hbm %s1729_s24, 32  ;;  %s1189_s17 = scalar_lea.hbm %s1821_s4, 512 }
 0x1ca   : > { %p1186_p7 = scmp.ne.s32.totalorder %s1729_s24, %s1185_s0  ;;  %p1190_p12 = scmp.lt.u32.totalorder %s1729_s24, %s1821_s4 }
 0x1cb   : > { %p1191_p0 = scmp.lt.u32.totalorder %s1189_s17, %s1185_s0  ;;  %p1193_p6 = scmp.lt.u32.totalorder %s1185_s0, %s1729_s24 }
 0x1cc   : > { %p1187_p4 = pnand %p1186_p7, %p1869_p3 }
 0x1cd   : > { %p1192_p1 = por %p1191_p0, %p1190_p12 }
 0x1ce   : > { %p1188_p5 = pneg %p1187_p4 }
 0x1cf   : > { %p1194_p9 = por %p1193_p6, %p1192_p1 }
 0x1d1   : > { %p1195_p8 = pnand %p1194_p9, %p1188_p5 }
 0x1d3   : > { %1198 = shalt.err (!%p1195_p8)
}
 0x1d4   : > { %954 = dma.vmem_to_hbm [thread:$0]  (%p1869_p3), %s1717_s14, 32, %s1729_s24, %s676_s8  }
 0x1d5   : > { %s681_s9 = scalar_lea.sflag [#allocation10], %s1634_s10  ;;  %s1199_s7 = scalar_lea.vmem %s1731_s30, 32 }
 0x1d6   : > { %p1200_p2 = scmp.ne.s32.totalorder %s1731_s30, %s1199_s7  ;;  %p1870_p13 = scmp.ne.s32.totalorder %s1857_s12, 0 }
 0x1d7   : > { %s1340_s15 = smov [#allocation9]  }
 0x1d8   : > { %p1201_p10 = pnand %p1200_p2, %p1870_p13  ;;  %s1203_s13 = sshll.u32 %s1340_s15, 4  ;;  %s1204_s13 = int_to_ptr.vmem [resolvable:$false] %s1203_s13 }
 0x1d9   : > { %s1205_s11 = scalar_lea.vmem %s1204_s13, 64  ;;  %p1206_p7 = scmp.lt.s32.totalorder %s1731_s30, %s1204_s13 }
 0x1da   : > { %p1202_p11 = pneg %p1201_p10  ;;  %p1207_p4 = scmp.lt.s32.totalorder %s1205_s11, %s1199_s7 }
 0x1dc   : > { %p1208_p5 = por %p1207_p4, %p1206_p7 }
 0x1de   : > { %p1209_p12 = pnand %p1208_p5, %p1202_p11 }
 0x1e0   : > { %1212 = shalt.err (!%p1209_p12)
}
 0x1e1   : > { %s1213_s29 = scalar_lea.hbm %s1723_s16, 32  ;;  %s1217_s24 = scalar_lea.hbm %s1822_s5, 64 }
 0x1e2   : > { %p1214_p3 = scmp.ne.s32.totalorder %s1723_s16, %s1213_s29  ;;  %p1218_p6 = scmp.lt.u32.totalorder %s1723_s16, %s1822_s5 }
 0x1e3   : > { %p1219_p9 = scmp.lt.u32.totalorder %s1217_s24, %s1213_s29  ;;  %p1221_p2 = scmp.lt.u32.totalorder %s1213_s29, %s1723_s16 }
 0x1e4   : > { %p1215_p0 = pnand %p1214_p3, %p1870_p13 }
 0x1e5   : > { %p1220_p8 = por %p1219_p9, %p1218_p6 }
 0x1e6   : > { %p1216_p1 = pneg %p1215_p0 }
 0x1e7   : > { %p1222_p10 = por %p1221_p2, %p1220_p8 }
 0x1e9   : > { %p1223_p11 = pnand %p1222_p10, %p1216_p1 }
 0x1eb   : > { %1226 = shalt.err (!%p1223_p11)
}
 0x1ec   : > { %955 = dma.vmem_to_hbm [thread:$0]  (%p1870_p13), %s1731_s30, 32, %s1723_s16, %s681_s9  }
 0x1ed PF: > { %s1871_s25 = sld [smem:[#allocation16_spill]]  ;;  %s1872_s6 = sld [smem:[#allocation23_spill]] }
 0x1ee   : > { %p973_p7 = scmp.ge.s32.totalorder %s1329_s28, 2 }
 0x1f3   : > { %s726_s23 = sand.u32 1, %s1871_s25   ;;  %p1873_p4 = scmp.ne.s32.totalorder %s1872_s6, 0 }
 0x1f4   : > { %s727_s0 = scalar_lea.sflag [#allocation5], %s726_s23 }
 0x1f5   : > { %p966_p5 = pnand %p973_p7, %p1873_p4 }
 0x1f7   : > { %1280 = dma.done.wait (!%p966_p5), %s727_s0, 32  }
 0x1f8   : > { %1282 = vsyncadd (!%p966_p5), %s727_s0, 4294967264  ;;  %s1874_s1 = sld [smem:[#allocation15_spill]]  ;;  %s1875_s2 = sld [smem:[#allocation24_spill]] }
 0x1fe   : > { %s735_s17 = sand.u32 1, %s1874_s1   ;;  %p1876_p12 = scmp.ne.s32.totalorder %s1875_s2, 0 }
 0x1ff   : > { %s736_s12 = scalar_lea.sflag [#allocation10], %s735_s17 }
 0x200   : > { %p969_p3 = pnand %p973_p7, %p1876_p12 }
 0x202   : > { %1284 = dma.done.wait (!%p969_p3), %s736_s12, 32  }
 0x203   : > { %1286 = vsyncadd (!%p969_p3), %s736_s12, 4294967264  ;;  %s28_s28 = sadd.s32 1, %s1329_s28   ;;  %s1877_s16 = sld [smem:[#allocation21_spill]] }
 0x204   : > { %p25_p13 = scmp.ge.s32.totalorder %s28_s28, 18   ;;  %s1878_s30 = sld [smem:[#allocation17_spill]] }
 0x205   : > { %s1879_s23 = sld [smem:[#allocation22_spill]]  ;;  %s1880_s24 = sld [smem:[#allocation18_spill]] }
 0x206   : > { %s1881_s26 = sld [smem:[#allocation19_spill]]  ;;  %s1882_s9 = sld [smem:[#allocation20_spill]] }
 0x207   : > { %s1883_s18 = smov %s1293_s19  ;;  %s1884_s19 = smov %s1297_s20 }
 0x208   : > { %s1886_s21 = smov %s1305_s22  ;;  %s1888_s25 = smov %s1325_s27 }
 0x209   : > { %s1885_s20 = smov %s1877_s16  ;;  %27 = sbr.rel (!%p25_p13) target bundleno = 17 (0x11), region = 122 }
 0x20a   : > { %s1887_s22 = smov %s1878_s30 }
 0x20c   : > { %s1889_s27 = smov %s1882_s9 }
 0x210   :  { %741 = vsyncpa [#allocation4], 1 }
 0x211   :  { %743 = vsyncpa [#allocation4 + $0x1], 1 }
 0x212   :  { %744 = vsyncpa [#allocation7], 1 }
 0x213   :  { %746 = vsyncpa [#allocation7 + $0x1], 1 }
 0x214   :  { %747 = vsyncpa [#allocation5], 1 }
 0x215   :  { %749 = vsyncpa [#allocation5 + $0x1], 1 }
 0x216   :  { %750 = vsyncpa [#allocation10], 1 }
 0x217   :  { %752 = vsyncpa [#allocation10 + $0x1], 1 }

</bundles_post_ra>
